<compile_context>
chip_gen: v7x
topology: tpu7x:2x2x1
jax: 0.10.0
libtpu: 0.0.40
codegen_flags: <defaults>
</compile_context>

<pallas_src>
import math

import jax
import jax.numpy as jnp
from jax.experimental import pallas as pl
from jax.experimental.pallas import tpu as pltpu


COMPUTE_DTYPE = jnp.bfloat16   # MXU operand dtype; f32 accumulation everywhere.
                               # set to jnp.float32 for bit-level parity.


def _round_up(x, m):
    return (x + m - 1) // m * m


def _vmem_limit_bytes():
    """Generation-aware VMEM budget: ~3/4 of physical, capped at 96 MiB.
       v7x (64 MiB physical) -> 48 MiB; v5e/v6e (128 MiB) -> 96 MiB."""
    try:
        cap = pltpu.get_tpu_info().vmem_capacity_bytes
        return int(min(cap * 3 // 4, 96 * 1024 * 1024))
    except Exception:
        return 32 * 1024 * 1024


_VMEM_LIMIT = _vmem_limit_bytes()


# ----------------------------------------------------------------------------
# Row-tiled linear projections (no activation stacking).
# ----------------------------------------------------------------------------
def _qkv_proj_kernel(xq_ref, xk_ref, xv_ref,
                     wq_ref, wk_ref, wv_ref,
                     bq_ref, bk_ref, bv_ref,
                     q_ref, k_ref, v_ref):
    # Activations arrive f32 and are cast to the MXU operand dtype in-register
    # (no extra HBM pass); accumulation and bias add stay f32.
    cd = wq_ref.dtype
    q_ref[...] = jnp.dot(xq_ref[...].astype(cd), wq_ref[...],
                         preferred_element_type=jnp.float32) + bq_ref[...]
    k_ref[...] = jnp.dot(xk_ref[...].astype(cd), wk_ref[...],
                         preferred_element_type=jnp.float32) + bk_ref[...]
    v_ref[...] = jnp.dot(xv_ref[...].astype(cd), wv_ref[...],
                         preferred_element_type=jnp.float32) + bv_ref[...]


def qkv_projection(xq, xk, xv, wq_t, wk_t, wv_t, bq, bk, bv, row_tile=512):
    """xq/xk/xv: [N, Dp] f32 (same N). One pallas_call, three MXU dots/step."""
    N, Dp = xq.shape
    tn = min(row_tile, _round_up(N, 8))
    n_pad = _round_up(N, tn)
    if n_pad != N:
        pad = ((0, n_pad - N), (0, 0))
        xq, xk, xv = (jnp.pad(a, pad) for a in (xq, xk, xv))

    w = [a.astype(COMPUTE_DTYPE) for a in (wq_t, wk_t, wv_t)]
    b = [a.reshape(1, Dp).astype(jnp.float32) for a in (bq, bk, bv)]

    x_spec = pl.BlockSpec((tn, Dp), lambda i: (i, 0))
    w_spec = pl.BlockSpec((Dp, Dp), lambda i: (0, 0))   # resident across row tiles
    b_spec = pl.BlockSpec((1, Dp), lambda i: (0, 0))
    o_spec = pl.BlockSpec((tn, Dp), lambda i: (i, 0))
    out_sd = jax.ShapeDtypeStruct((n_pad, Dp), jnp.float32)

    q, k, v = pl.pallas_call(
        _qkv_proj_kernel,
        out_shape=(out_sd, out_sd, out_sd),
        grid_spec=pltpu.PrefetchScalarGridSpec(
            num_scalar_prefetch=0,
            grid=(n_pad // tn,),
            in_specs=[x_spec, x_spec, x_spec,
                      w_spec, w_spec, w_spec,
                      b_spec, b_spec, b_spec],
            out_specs=[o_spec, o_spec, o_spec],
        ),
        compiler_params=pltpu.CompilerParams(
            dimension_semantics=("parallel",),
            vmem_limit_bytes=_VMEM_LIMIT,
        ),
    )(xq, xk, xv, *w, *b)
    return q[:N], k[:N], v[:N]


def _proj_kernel(x_ref, w_ref, b_ref, o_ref):
    o_ref[...] = jnp.dot(x_ref[...].astype(w_ref.dtype), w_ref[...],
                         preferred_element_type=jnp.float32) + b_ref[...]


def linear(x, w_t, bias, row_tile=512):
    """Single projection (used only when L != S). x: [N, Din] f32."""
    N, Din = x.shape
    Dout = w_t.shape[1]
    tn = min(row_tile, _round_up(N, 8))
    n_pad = _round_up(N, tn)
    if n_pad != N:
        x = jnp.pad(x, ((0, n_pad - N), (0, 0)))
    out = pl.pallas_call(
        _proj_kernel,
        out_shape=jax.ShapeDtypeStruct((n_pad, Dout), jnp.float32),
        grid_spec=pltpu.PrefetchScalarGridSpec(
            num_scalar_prefetch=0,
            grid=(n_pad // tn,),
            in_specs=[pl.BlockSpec((tn, Din), lambda i: (i, 0)),
                      pl.BlockSpec((Din, Dout), lambda i: (0, 0)),
                      pl.BlockSpec((1, Dout), lambda i: (0, 0))],
            out_specs=pl.BlockSpec((tn, Dout), lambda i: (i, 0)),
        ),
        compiler_params=pltpu.CompilerParams(
            dimension_semantics=("parallel",),
            vmem_limit_bytes=_VMEM_LIMIT,
        ),
    )(x, w_t.astype(COMPUTE_DTYPE), bias.reshape(1, Dout).astype(jnp.float32))
    return out[:N]


# ----------------------------------------------------------------------------
# Time-delay aggregation fused with the output projection.
#   out[b, j, :] = ( sum_i w[b,i] * v[b, (j + d_i) mod L, :] ) @ Wo + bo
# K weighted circular shifts via dynamic slices into a [2L, C] VMEM buffer.
# ----------------------------------------------------------------------------
def _agg_out_kernel(idx_ref, wgt_ref, v_ref, wo_ref, bo_ref, o_ref, v2_ref):
    b = pl.program_id(0)
    t = pl.program_id(1)
    L = v_ref.shape[1]
    TQ = o_ref.shape[1]
    C = v_ref.shape[2]
    K = idx_ref.shape[0]

    # Build the [2L, C] circular double buffer once per batch element.  The
    # seq-tile axis is "arbitrary", so all tiles of a given b run on one core
    # and the scratch persists across them.
    @pl.when(t == 0)
    def _():
        v2_ref[pl.ds(0, L), :] = v_ref[0]
        v2_ref[pl.ds(L, L), :] = v_ref[0]

    j0 = t * TQ

    # K weighted circular shifts: O(K * TQ * C), no [L, L] selection matrix.
    def body(i, acc):
        d = idx_ref[i]                       # shared-across-batch delay, 0 <= d < L
        w = wgt_ref[b * K + i]               # per-batch softmax weight (flat SMEM)
        return acc + w * v2_ref[pl.ds(j0 + d, TQ), :]

    agg = jax.lax.fori_loop(0, K, body,
                            jnp.zeros((TQ, C), jnp.float32), unroll=True)

    # Fused output projection: MXU with bf16 operands, f32 accumulation.
    o_ref[0] = (jnp.dot(agg.astype(wo_ref.dtype), wo_ref[...],
                        preferred_element_type=jnp.float32)
                + bo_ref[...])


def _pick_seq_tile(L, cap=256):
    if L <= cap:
        return L
    t = cap - cap % 8
    while t >= 8:
        if L % t == 0:
            return t
        t -= 8
    return L


def agg_and_out_projection(v, delays, weights, wo_t, bo, seq_tile=256):
    """v: [B, L, C] f32, delays: [K] i32, weights: [B, K] f32 -> [B, L, Dout]."""
    B, L, C = v.shape
    Dout = wo_t.shape[-1]
    tq = _pick_seq_tile(L, seq_tile)
    return pl.pallas_call(
        _agg_out_kernel,
        out_shape=jax.ShapeDtypeStruct((B, L, Dout), jnp.float32),
        grid_spec=pltpu.PrefetchScalarGridSpec(
            num_scalar_prefetch=2,          # delays, weights -> SMEM
            grid=(B, L // tq),
            in_specs=[
                pl.BlockSpec((1, L, C), lambda b, t, idx, wgt: (b, 0, 0)),
                pl.BlockSpec((C, Dout), lambda b, t, idx, wgt: (0, 0)),
                pl.BlockSpec((1, Dout), lambda b, t, idx, wgt: (0, 0)),
            ],
            out_specs=pl.BlockSpec((1, tq, Dout),
                                   lambda b, t, idx, wgt: (b, t, 0)),
            scratch_shapes=[pltpu.VMEM((2 * L, C), jnp.float32)],
        ),
        compiler_params=pltpu.CompilerParams(
            dimension_semantics=("parallel", "arbitrary"),
            vmem_limit_bytes=_VMEM_LIMIT,
        ),
    )(delays.astype(jnp.int32),
      weights.reshape(-1).astype(jnp.float32),     # flat [B*K] -> SMEM 1-D
      v.astype(jnp.float32),
      wo_t.astype(COMPUTE_DTYPE),
      bo.reshape(1, Dout).astype(jnp.float32))


# ----------------------------------------------------------------------------
# AutoCorrelation glue (FFT correlation + top-k delay selection, XLA)
# ----------------------------------------------------------------------------
def _autocorrelation_delays(q, k, L, d_model_true, factor):
    """q, k: [B, L, Cpad] f32 -> (delays [K] int32, softmax weights [B, K])."""
    # TODO(synk): rfft/irfft have no Pallas TPU equivalent; computed in XLA.
    qc = jnp.swapaxes(q.astype(jnp.float32), 1, 2)               # [B, C, L]
    kc = jnp.swapaxes(k.astype(jnp.float32), 1, 2)
    q_fft = jnp.fft.rfft(qc, axis=-1)
    k_fft = jnp.fft.rfft(kc, axis=-1)
    corr = jnp.fft.irfft(q_fft * jnp.conj(k_fft), n=L, axis=-1)  # [B, C, L]

    top_k = max(1, int(factor * math.log(L)))   # guard K >= 1 for tiny L
    # Padded channels are all-zero, so sum over channels / true d_model equals
    # the reference mean over (heads, head_dim).
    mean_value = jnp.sum(corr, axis=1) / d_model_true            # [B, L]
    _, index = jax.lax.top_k(jnp.mean(mean_value, axis=0), top_k)  # [K]
    weights = jnp.take(mean_value, index, axis=1)                # [B, K]
    tmp_corr = jax.nn.softmax(weights, axis=-1)                  # [B, K]
    return index, tmp_corr


# ----------------------------------------------------------------------------
# AutoCorrelationLayer forward (training path, output_attention=False)
# ----------------------------------------------------------------------------
def autocorrelation_layer(params, queries, keys, values, attn_mask=None,
                          n_heads=4, factor=1):
    # attn_mask is ignored exactly as in the reference AutoCorrelation.
    # The [B, L, H, E] head split is a pure reshape; the correlation mean
    # (over H and E) and the per-channel roll aggregation are identical on the
    # flattened channel axis, so the lane-dense [B, L, d_model] layout is kept.
    del attn_mask, n_heads
    B, L, d_model = queries.shape
    _, S, _ = keys.shape

    # --- lane-dense channel padding (d_model -> multiple of 128) ------------
    Dp = _round_up(d_model, 128)

    def pad_c(x):
        if x.shape[-1] == Dp:
            return x
        widths = ((0, 0),) * (x.ndim - 1) + ((0, Dp - x.shape[-1]),)
        return jnp.pad(x, widths)

    def pad_w(w):
        if w.shape == (Dp, Dp):
            return w
        return jnp.pad(w, ((0, Dp - w.shape[0]), (0, Dp - w.shape[1])))

    def pad_b(b):
        if b.shape[0] == Dp:
            return b
        return jnp.pad(b, (0, Dp - b.shape[0]))

    wq, wk, wv, wo = (pad_w(params[n]) for n in ("wq_t", "wk_t", "wv_t", "wo_t"))
    bq, bk, bv, bo = (pad_b(params[n]) for n in ("bq", "bk", "bv", "bo"))

    xq = pad_c(queries).reshape(B * L, Dp).astype(jnp.float32)
    xk = pad_c(keys).reshape(B * S, Dp).astype(jnp.float32)
    xv = pad_c(values).reshape(B * S, Dp).astype(jnp.float32)

    # --- Q/K/V projections (single pallas_call when L == S) -----------------
    if L == S:
        q2, k2, v2 = qkv_projection(xq, xk, xv, wq, wk, wv, bq, bk, bv)
    else:
        q2 = linear(xq, wq, bq)
        k2 = linear(xk, wk, bk)
        v2 = linear(xv, wv, bv)

    q = q2.reshape(B, L, Dp)
    k = k2.reshape(B, S, Dp)
    v = v2.reshape(B, S, Dp)

    # pad / truncate keys & values to length L (matches the reference)
    if L > S:
        zpad = jnp.zeros((B, L - S, Dp), jnp.float32)
        k = jnp.concatenate([k, zpad], axis=1)
        v = jnp.concatenate([v, zpad], axis=1)
    else:
        k = k[:, :L]
        v = v[:, :L]

    delays, weights = _autocorrelation_delays(q, k, L, d_model, factor)

    # time-delay aggregation + output projection, fused in one Pallas kernel
    out = agg_and_out_projection(v, delays, weights, wo, bo)
    return out[..., :d_model], None     # output_attention=False


def init_params(key, d_model):
    bound = 1.0 / math.sqrt(d_model)
    keys = jax.random.split(key, 8)

    def w(k):  # stored pre-transposed: [in, out]  (y = x @ W_t + b)
        return jax.random.uniform(k, (d_model, d_model), jnp.float32, -bound, bound)

    def b(k):
        return jax.random.uniform(k, (d_model,), jnp.float32, -bound, bound)

    return {
        "wq_t": w(keys[0]), "bq": b(keys[1]),
        "wk_t": w(keys[2]), "bk": b(keys[3]),
        "wv_t": w(keys[4]), "bv": b(keys[5]),
        "wo_t": w(keys[6]), "bo": b(keys[7]),
    }


if __name__ == "__main__":
    B, L, S, d_model, n_heads = 2, 16, 16, 32, 4

    root = jax.random.PRNGKey(0)
    kp, kq, kk, kv = jax.random.split(root, 4)
    params = init_params(kp, d_model)
    queries = jax.random.normal(kq, (B, L, d_model), jnp.float32)
    keys = jax.random.normal(kk, (B, S, d_model), jnp.float32)
    values = jax.random.normal(kv, (B, S, d_model), jnp.float32)

    out, attn = autocorrelation_layer(params, queries, keys, values,
                                      attn_mask=None, n_heads=n_heads)
    out = jax.block_until_ready(out)
    assert out.shape == (B, L, d_model)
    assert attn is None
    print("KERNEL_OK")
</pallas_src>

<mosaic_0001>
module attributes {stable_mosaic.version = 11 : i64} {
  func.func @_qkv_proj_kernel(%arg0: i32, %arg1: memref<32x128xf32, #tpu.memory_space<vmem>>, %arg2: memref<32x128xf32, #tpu.memory_space<vmem>>, %arg3: memref<32x128xf32, #tpu.memory_space<vmem>>, %arg4: memref<128x128xbf16, #tpu.memory_space<vmem>>, %arg5: memref<128x128xbf16, #tpu.memory_space<vmem>>, %arg6: memref<128x128xbf16, #tpu.memory_space<vmem>>, %arg7: memref<1x128xf32, #tpu.memory_space<vmem>>, %arg8: memref<1x128xf32, #tpu.memory_space<vmem>>, %arg9: memref<1x128xf32, #tpu.memory_space<vmem>>, %arg10: memref<32x128xf32, #tpu.memory_space<vmem>>, %arg11: memref<32x128xf32, #tpu.memory_space<vmem>>, %arg12: memref<32x128xf32, #tpu.memory_space<vmem>>) attributes {dimension_semantics = [#tpu.dimension_semantics<parallel>], iteration_bounds = array<i64: 1>, scalar_prefetch = 0 : i64, scratch_operands = 0 : i64, tpu.core_type = #tpu.core_type<tc>, window_params = [{transform_indices = @transform_0, window_bounds = array<i64: 32, 128>}, {transform_indices = @transform_1, window_bounds = array<i64: 32, 128>}, {transform_indices = @transform_2, window_bounds = array<i64: 32, 128>}, {pipeline_mode = #tpu.pipeline_mode<synchronous>, transform_indices = @transform_3, window_bounds = array<i64: 128, 128>}, {pipeline_mode = #tpu.pipeline_mode<synchronous>, transform_indices = @transform_4, window_bounds = array<i64: 128, 128>}, {pipeline_mode = #tpu.pipeline_mode<synchronous>, transform_indices = @transform_5, window_bounds = array<i64: 128, 128>}, {pipeline_mode = #tpu.pipeline_mode<synchronous>, transform_indices = @transform_6, window_bounds = array<i64: 1, 128>}, {pipeline_mode = #tpu.pipeline_mode<synchronous>, transform_indices = @transform_7, window_bounds = array<i64: 1, 128>}, {pipeline_mode = #tpu.pipeline_mode<synchronous>, transform_indices = @transform_8, window_bounds = array<i64: 1, 128>}, {transform_indices = @transform_9, window_bounds = array<i64: 32, 128>}, {transform_indices = @transform_10, window_bounds = array<i64: 32, 128>}, {transform_indices = @transform_11, window_bounds = array<i64: 32, 128>}]} {
    %c0 = arith.constant 0 : index
    %c0_0 = arith.constant 0 : index
    %0 = vector.load %arg1[%c0, %c0_0] : memref<32x128xf32, #tpu.memory_space<vmem>>, vector<32x128xf32>
    %1 = arith.truncf %0 : vector<32x128xf32> to vector<32x128xbf16>
    %c0_1 = arith.constant 0 : index
    %c0_2 = arith.constant 0 : index
    %2 = vector.load %arg4[%c0_1, %c0_2] : memref<128x128xbf16, #tpu.memory_space<vmem>>, vector<128x128xbf16>
    %cst = arith.constant dense<0.000000e+00> : vector<32x128xf32>
    %3 = tpu.matmul %1, %2, %cst {dimension_numbers = #tpu.dot_dimension_numbers<[1], [0], [0], [1], [0, 0, 1, 1], [], []>} : vector<32x128xbf16>, vector<128x128xbf16>, vector<32x128xf32> -> vector<32x128xf32>
    %c0_3 = arith.constant 0 : index
    %c0_4 = arith.constant 0 : index
    %4 = vector.load %arg7[%c0_3, %c0_4] : memref<1x128xf32, #tpu.memory_space<vmem>>, vector<1x128xf32>
    %5 = vector.broadcast %4 : vector<1x128xf32> to vector<32x128xf32>
    %6 = arith.addf %3, %5 : vector<32x128xf32>
    %c0_5 = arith.constant 0 : index
    %c0_6 = arith.constant 0 : index
    %7 = vector.load %arg10[%c0_5, %c0_6] : memref<32x128xf32, #tpu.memory_space<vmem>>, vector<32x128xf32>
    tpu.vector_store %arg10[%c0_5, %c0_6], %6 {strides = array<i32>} : memref<32x128xf32, #tpu.memory_space<vmem>>, vector<32x128xf32>,
    %c0_7 = arith.constant 0 : index
    %c0_8 = arith.constant 0 : index
    %8 = vector.load %arg2[%c0_7, %c0_8] : memref<32x128xf32, #tpu.memory_space<vmem>>, vector<32x128xf32>
    %9 = arith.truncf %8 : vector<32x128xf32> to vector<32x128xbf16>
    %c0_9 = arith.constant 0 : index
    %c0_10 = arith.constant 0 : index
    %10 = vector.load %arg5[%c0_9, %c0_10] : memref<128x128xbf16, #tpu.memory_space<vmem>>, vector<128x128xbf16>
    %cst_11 = arith.constant dense<0.000000e+00> : vector<32x128xf32>
    %11 = tpu.matmul %9, %10, %cst_11 {dimension_numbers = #tpu.dot_dimension_numbers<[1], [0], [0], [1], [0, 0, 1, 1], [], []>} : vector<32x128xbf16>, vector<128x128xbf16>, vector<32x128xf32> -> vector<32x128xf32>
    %c0_12 = arith.constant 0 : index
    %c0_13 = arith.constant 0 : index
    %12 = vector.load %arg8[%c0_12, %c0_13] : memref<1x128xf32, #tpu.memory_space<vmem>>, vector<1x128xf32>
    %13 = vector.broadcast %12 : vector<1x128xf32> to vector<32x128xf32>
    %14 = arith.addf %11, %13 : vector<32x128xf32>
    %c0_14 = arith.constant 0 : index
    %c0_15 = arith.constant 0 : index
    %15 = vector.load %arg11[%c0_14, %c0_15] : memref<32x128xf32, #tpu.memory_space<vmem>>, vector<32x128xf32>
    tpu.vector_store %arg11[%c0_14, %c0_15], %14 {strides = array<i32>} : memref<32x128xf32, #tpu.memory_space<vmem>>, vector<32x128xf32>,
    %c0_16 = arith.constant 0 : index
    %c0_17 = arith.constant 0 : index
    %16 = vector.load %arg3[%c0_16, %c0_17] : memref<32x128xf32, #tpu.memory_space<vmem>>, vector<32x128xf32>
    %17 = arith.truncf %16 : vector<32x128xf32> to vector<32x128xbf16>
    %c0_18 = arith.constant 0 : index
    %c0_19 = arith.constant 0 : index
    %18 = vector.load %arg6[%c0_18, %c0_19] : memref<128x128xbf16, #tpu.memory_space<vmem>>, vector<128x128xbf16>
    %cst_20 = arith.constant dense<0.000000e+00> : vector<32x128xf32>
    %19 = tpu.matmul %17, %18, %cst_20 {dimension_numbers = #tpu.dot_dimension_numbers<[1], [0], [0], [1], [0, 0, 1, 1], [], []>} : vector<32x128xbf16>, vector<128x128xbf16>, vector<32x128xf32> -> vector<32x128xf32>
    %c0_21 = arith.constant 0 : index
    %c0_22 = arith.constant 0 : index
    %20 = vector.load %arg9[%c0_21, %c0_22] : memref<1x128xf32, #tpu.memory_space<vmem>>, vector<1x128xf32>
    %21 = vector.broadcast %20 : vector<1x128xf32> to vector<32x128xf32>
    %22 = arith.addf %19, %21 : vector<32x128xf32>
    %c0_23 = arith.constant 0 : index
    %c0_24 = arith.constant 0 : index
    %23 = vector.load %arg12[%c0_23, %c0_24] : memref<32x128xf32, #tpu.memory_space<vmem>>, vector<32x128xf32>
    tpu.vector_store %arg12[%c0_23, %c0_24], %22 {strides = array<i32>} : memref<32x128xf32, #tpu.memory_space<vmem>>, vector<32x128xf32>,
    return
  }
  func.func @transform_0(%arg0: i32) -> (i32, i32) {
    %c0_i32 = arith.constant 0 : i32
    %c0_i32_0 = arith.constant 0 : i32
    return %arg0, %c0_i32 : i32, i32
  }
  func.func @transform_1(%arg0: i32) -> (i32, i32) {
    %c0_i32 = arith.constant 0 : i32
    %c0_i32_0 = arith.constant 0 : i32
    return %arg0, %c0_i32 : i32, i32
  }
  func.func @transform_2(%arg0: i32) -> (i32, i32) {
    %c0_i32 = arith.constant 0 : i32
    %c0_i32_0 = arith.constant 0 : i32
    return %arg0, %c0_i32 : i32, i32
  }
  func.func @transform_3(%arg0: i32) -> (i32, i32) {
    %c0_i32 = arith.constant 0 : i32
    %c0_i32_0 = arith.constant 0 : i32
    %c0_i32_1 = arith.constant 0 : i32
    return %c0_i32, %c0_i32_0 : i32, i32
  }
  func.func @transform_4(%arg0: i32) -> (i32, i32) {
    %c0_i32 = arith.constant 0 : i32
    %c0_i32_0 = arith.constant 0 : i32
    %c0_i32_1 = arith.constant 0 : i32
    return %c0_i32, %c0_i32_0 : i32, i32
  }
  func.func @transform_5(%arg0: i32) -> (i32, i32) {
    %c0_i32 = arith.constant 0 : i32
    %c0_i32_0 = arith.constant 0 : i32
    %c0_i32_1 = arith.constant 0 : i32
    return %c0_i32, %c0_i32_0 : i32, i32
  }
  func.func @transform_6(%arg0: i32) -> (i32, i32) {
    %c0_i32 = arith.constant 0 : i32
    %c0_i32_0 = arith.constant 0 : i32
    %c0_i32_1 = arith.constant 0 : i32
    return %c0_i32, %c0_i32_0 : i32, i32
  }
  func.func @transform_7(%arg0: i32) -> (i32, i32) {
    %c0_i32 = arith.constant 0 : i32
    %c0_i32_0 = arith.constant 0 : i32
    %c0_i32_1 = arith.constant 0 : i32
    return %c0_i32, %c0_i32_0 : i32, i32
  }
  func.func @transform_8(%arg0: i32) -> (i32, i32) {
    %c0_i32 = arith.constant 0 : i32
    %c0_i32_0 = arith.constant 0 : i32
    %c0_i32_1 = arith.constant 0 : i32
    return %c0_i32, %c0_i32_0 : i32, i32
  }
  func.func @transform_9(%arg0: i32) -> (i32, i32) {
    %c0_i32 = arith.constant 0 : i32
    %c0_i32_0 = arith.constant 0 : i32
    return %arg0, %c0_i32 : i32, i32
  }
  func.func @transform_10(%arg0: i32) -> (i32, i32) {
    %c0_i32 = arith.constant 0 : i32
    %c0_i32_0 = arith.constant 0 : i32
    return %arg0, %c0_i32 : i32, i32
  }
  func.func @transform_11(%arg0: i32) -> (i32, i32) {
    %c0_i32 = arith.constant 0 : i32
    %c0_i32_0 = arith.constant 0 : i32
    return %arg0, %c0_i32 : i32, i32
  }
}

</mosaic_0001>

<bundles_post_ra>
// kernel: tpu_custom_call.1
= control target key start
LH: loop header
LB: loop body
LE: loop exit
PB: predicated region body
PF: predicated region fallthrough
CT: control target
= control target key end

     0   :  { %17 = vsyncpa [#allocation3], 0  ;;  %s1163_s0 = inlined_call_operand.hbm [shape: f32[32,128], index: 0, kind: input, shape index: {}]   ;;  %s1164_s1 = inlined_call_operand.hbm [shape: f32[32,128], index: 1, kind: input, shape index: {}]   ;;  %s1165_s2 = inlined_call_operand.hbm [shape: f32[32,128], index: 2, kind: input, shape index: {}]   ;;  %s1166_s3 = inlined_call_operand.hbm [shape: bf16[128,128], index: 3, kind: input, shape index: {}]   ;;  %s1167_s4 = inlined_call_operand.hbm [shape: bf16[128,128], index: 4, kind: input, shape index: {}]   ;;  %s1168_s5 = inlined_call_operand.hbm [shape: bf16[128,128], index: 5, kind: input, shape index: {}]   ;;  %s1169_s6 = inlined_call_operand.vmem [shape: f32[1,128], index: 6, kind: input, shape index: {}]   ;;  %s1170_s7 = inlined_call_operand.vmem [shape: f32[1,128], index: 7, kind: input, shape index: {}]   ;;  %s1171_s8 = inlined_call_operand.vmem [shape: f32[1,128], index: 8, kind: input, shape index: {}]   ;;  %s1172_s9 = inlined_call_operand.hbm [shape: f32[32,128], index: 9, kind: output, shape index: {0}]   ;;  %s1173_s10 = inlined_call_operand.hbm [shape: f32[32,128], index: 10, kind: output, shape index: {1}]   ;;  %s1174_s11 = inlined_call_operand.hbm [shape: f32[32,128], index: 11, kind: output, shape index: {2}]  }
   0x1   :  { %18 = vsyncpa [#allocation6], 0 }
   0x2   :  { %19 = vsyncpa [#allocation9], 0 }
   0x3   :  { %20 = vsyncpa [#allocation12], 0 }
   0x4   :  { %21 = vsyncpa [#allocation4], 0 }
   0x5   :  { %22 = vsyncpa [#allocation15], 0  ;;  %s925_s17 = smov [#allocation5]   ;;  %s926_s19 = smov [#allocation8]  }
   0x6   :  { %s40_s18 = sshll.u32 %s925_s17, 4  ;;  %s64_s20 = sshll.u32 %s926_s19, 4  ;;  %s41_s18 = int_to_ptr.vmem [resolvable:$true] %s40_s18  ;;  %s998_s20 = int_to_ptr.vmem [resolvable:$true] %s64_s20 }
   0x7   :  { %s715_s23 = scalar_lea.hbm %s1164_s1, 512 }
   0x8   :  { %p716_p0 = scmp.ne.s32.totalorder %s1164_s1, %s715_s23  ;;  %p719_p1 = scmp.lt.u32.totalorder %s715_s23, %s1164_s1 }
   0xa   :  { %p721_p2 = pnand %p719_p1, %p716_p0 }
   0xc   :  { %724 = shalt.err (!%p721_p2)
}
   0xd   :  { %s725_s28 = scalar_lea.vmem %s41_s18, 512  ;;  %p730_p4 = scmp.lt.s32.totalorder %s41_s18, %s41_s18 }
   0xe   :  { %p726_p3 = scmp.ne.s32.totalorder %s41_s18, %s725_s28  ;;  %p731_p5 = scmp.lt.s32.totalorder %s725_s28, %s725_s28 }
  0x10   :  { %p732_p6 = por %p731_p5, %p730_p4 }
  0x12   :  { %p733_p7 = pnand %p732_p6, %p726_p3 }
  0x14   :  { %736 = shalt.err (!%p733_p7)
}
  0x15   :  { %s927_s29 = smov 128   ;;  %s928_s30 = smov 8  }
  0x16   :  { %46 = dma.hbm_to_vmem [thread:$0]  %s1164_s1, 512, %s41_s18, [#allocation6], %s927_s29, %s927_s29, %s928_s30  }
  0x17   :  { %s737_s16 = scalar_lea.hbm %s1166_s3, 1024 }
  0x18   :  { %p738_p8 = scmp.ne.s32.totalorder %s1166_s3, %s737_s16  ;;  %p741_p9 = scmp.lt.u32.totalorder %s737_s16, %s1166_s3 }
  0x1a   :  { %p743_p10 = pnand %p741_p9, %p738_p8 }
  0x1c   :  { %746 = shalt.err (!%p743_p10)
}
  0x1d   :  { %s747_s23 = scalar_lea.vmem %s998_s20, 1024  ;;  %p752_p12 = scmp.lt.s32.totalorder %s998_s20, %s998_s20 }
  0x1e   :  { %p748_p11 = scmp.ne.s32.totalorder %s998_s20, %s747_s23  ;;  %p753_p13 = scmp.lt.s32.totalorder %s747_s23, %s747_s23 }
  0x20   :  { %p754_p0 = por %p753_p13, %p752_p12 }
  0x22   :  { %p755_p1 = pnand %p754_p0, %p748_p11 }
  0x24   :  { %758 = shalt.err (!%p755_p1)
}
  0x25   :  { %s929_s1 = smov 64   ;;  %s930_s18 = smov 4  }
  0x26   :  { %70 = dma.hbm_to_vmem [thread:$0]  %s1166_s3, 1024, %s998_s20, [#allocation9], %s929_s1, %s929_s1, %s930_s18  }
  0x27   :  { %s931_s26 = smov [#allocation2]   ;;  %s932_s28 = smov [#allocation7]  }
  0x28   :  { %s28_s27 = sshll.u32 %s931_s26, 4  ;;  %s52_s12 = sshll.u32 %s932_s28, 4  ;;  %s29_s27 = int_to_ptr.vmem [resolvable:$true] %s28_s27  ;;  %s1035_s12 = int_to_ptr.vmem [resolvable:$true] %s52_s12 }
  0x29   :  { %s759_s15 = scalar_lea.hbm %s1163_s0, 512 }
  0x2a   :  { %p760_p2 = scmp.ne.s32.totalorder %s1163_s0, %s759_s15  ;;  %p763_p3 = scmp.lt.u32.totalorder %s759_s15, %s1163_s0 }
  0x2c   :  { %p765_p4 = pnand %p763_p3, %p760_p2 }
  0x2e   :  { %768 = shalt.err (!%p765_p4)
}
  0x2f   :  { %s769_s3 = scalar_lea.vmem %s29_s27, 512  ;;  %p774_p6 = scmp.lt.s32.totalorder %s29_s27, %s29_s27 }
  0x30   :  { %p770_p5 = scmp.ne.s32.totalorder %s29_s27, %s769_s3  ;;  %p775_p7 = scmp.lt.s32.totalorder %s769_s3, %s769_s3 }
  0x32   :  { %p776_p8 = por %p775_p7, %p774_p6 }
  0x34   :  { %p777_p9 = pnand %p776_p8, %p770_p5 }
  0x36   :  { %780 = shalt.err (!%p777_p9)
}
  0x37   :  { %34 = dma.hbm_to_vmem [thread:$0]  %s1163_s0, 512, %s29_s27, [#allocation3], %s927_s29, %s927_s29, %s928_s30  }
  0x38   :  { %s781_s25 = scalar_lea.hbm %s1165_s2, 512 }
  0x39   :  { %p782_p10 = scmp.ne.s32.totalorder %s1165_s2, %s781_s25  ;;  %p785_p11 = scmp.lt.u32.totalorder %s781_s25, %s1165_s2 }
  0x3b   :  { %p787_p12 = pnand %p785_p11, %p782_p10 }
  0x3d   :  { %790 = shalt.err (!%p787_p12)
}
  0x3e   :  { %s791_s15 = scalar_lea.vmem %s1035_s12, 512  ;;  %p796_p0 = scmp.lt.s32.totalorder %s1035_s12, %s1035_s12 }
  0x3f   :  { %p792_p13 = scmp.ne.s32.totalorder %s1035_s12, %s791_s15  ;;  %p797_p1 = scmp.lt.s32.totalorder %s791_s15, %s791_s15 }
  0x41   :  { %p798_p2 = por %p797_p1, %p796_p0 }
  0x43   :  { %p799_p3 = pnand %p798_p2, %p792_p13 }
  0x45   :  { %802 = shalt.err (!%p799_p3)
}
  0x46   :  { %58 = dma.hbm_to_vmem [thread:$0]  %s1165_s2, 512, %s1035_s12, [#allocation6], %s927_s29, %s927_s29, %s928_s30  }
  0x47   :  { %s933_s16 = smov [#allocation10]   ;;  %s934_s19 = smov [#allocation11]  }
  0x48   :  { %s76_s17 = sshll.u32 %s933_s16, 4  ;;  %s88_s21 = sshll.u32 %s934_s19, 4  ;;  %s77_s17 = int_to_ptr.vmem [resolvable:$true] %s76_s17  ;;  %s1072_s21 = int_to_ptr.vmem [resolvable:$true] %s88_s21 }
  0x49   :  { %s803_s22 = scalar_lea.hbm %s1167_s4, 1024 }
  0x4a   :  { %p804_p4 = scmp.ne.s32.totalorder %s1167_s4, %s803_s22  ;;  %p807_p5 = scmp.lt.u32.totalorder %s803_s22, %s1167_s4 }
  0x4c   :  { %p809_p6 = pnand %p807_p5, %p804_p4 }
  0x4e   :  { %812 = shalt.err (!%p809_p6)
}
  0x4f   :  { %s813_s2 = scalar_lea.vmem %s77_s17, 1024  ;;  %p818_p8 = scmp.lt.s32.totalorder %s77_s17, %s77_s17 }
  0x50   :  { %p814_p7 = scmp.ne.s32.totalorder %s77_s17, %s813_s2  ;;  %p819_p9 = scmp.lt.s32.totalorder %s813_s2, %s813_s2 }
  0x52   :  { %p820_p10 = por %p819_p9, %p818_p8 }
  0x54   :  { %p821_p11 = pnand %p820_p10, %p814_p7 }
  0x56   :  { %824 = shalt.err (!%p821_p11)
}
  0x57   :  { %82 = dma.hbm_to_vmem [thread:$0]  %s1167_s4, 1024, %s77_s17, [#allocation9], %s929_s1, %s929_s1, %s930_s18  }
  0x58   :  { %s825_s15 = scalar_lea.hbm %s1168_s5, 1024 }
  0x59   :  { %p826_p12 = scmp.ne.s32.totalorder %s1168_s5, %s825_s15  ;;  %p829_p13 = scmp.lt.u32.totalorder %s825_s15, %s1168_s5 }
  0x5b   :  { %p831_p0 = pnand %p829_p13, %p826_p12 }
  0x5d   :  { %834 = shalt.err (!%p831_p0)
}
  0x5e   :  { %s835_s3 = scalar_lea.vmem %s1072_s21, 1024  ;;  %p840_p2 = scmp.lt.s32.totalorder %s1072_s21, %s1072_s21 }
  0x5f   :  { %p836_p1 = scmp.ne.s32.totalorder %s1072_s21, %s835_s3  ;;  %p841_p3 = scmp.lt.s32.totalorder %s835_s3, %s835_s3 }
  0x61   :  { %p842_p4 = por %p841_p3, %p840_p2 }
  0x63   :  { %p843_p5 = pnand %p842_p4, %p836_p1 }
  0x65   :  { %846 = shalt.err (!%p843_p5)
}
  0x66   :  { %94 = dma.hbm_to_vmem [thread:$0]  %s1168_s5, 1024, %s1072_s21, [#allocation12], %s929_s1, %s929_s1, %s930_s18  }
  0x67   :  { %913 = dma.done.wait [#allocation3], 512  }
  0x68   :  { %914 = vsyncadd [#allocation3], 4294966784 }
  0x69   :  { %915 = dma.done.wait [#allocation6], 1024  }
  0x6a   :  { %916 = vsyncadd [#allocation6], 4294966272 }
  0x6b   :  { %917 = dma.done.wait [#allocation9], 2048  }
  0x6c   :  { %918 = vsyncadd [#allocation9], 4294965248 }
  0x6d   :  { %919 = dma.done.wait [#allocation12], 1024  }
  0x6e   :  { %920 = vsyncadd [#allocation12], 4294966272  ;;  %v691_v0 = vld [vmem:[#allocation8] sm:$0xff]   ;;  %v692_v1 = vld [vmem:[#allocation8 + $0x8] sm:$0xff]   ;;  %s935_s18 = smov [#allocation13]  }
  0x6f   :  { %618 = vmatprep.subr.bf16.mxu0 %v691_v0  ;;  %v693_v2 = vld [vmem:[#allocation8 + $0x10] sm:$0xff]   ;;  %v694_v3 = vld [vmem:[#allocation8 + $0x18] sm:$0xff]   ;;  %v699_v4 = vld [vmem:[#allocation10] sm:$0xff]   ;;  %s515_s21 = sshll.u32 %s935_s18, 4  ;;  %s516_s21 = int_to_ptr.vmem [resolvable:$true] %s515_s21 }
  0x70   :  { %619 = vmatpush3.bf16.msra.mxu0 %v691_v0  ;;  %v120_v5 = vld [vmem:[#allocation2] sm:$0xff]  ;;  %v121_v6 = vld [vmem:[#allocation2 + $0x8] sm:$0xff]  ;;  %638 = vmatprep.subr.bf16.mxu1 %v699_v4  ;;  %v702_v10 = vld [vmem:[#allocation10 + $0x10] sm:$0xff]   ;;  %p852_p7 = scmp.lt.s32.totalorder %s516_s21, %s516_s21 }
  0x71   :  { %620 = vmatprep.subr.bf16.mxu0 %v692_v1  ;;  %v124_v7 = vpack.c.bf16 %v121_v6, %v120_v5  ;;  %639 = vmatpush3.bf16.msra.mxu1 %v699_v4  ;;  %v700_v8 = vld [vmem:[#allocation10 + $0x8] sm:$0xff]   ;;  %v695_v9 = vld [vmem:[#allocation8 + $0x20] sm:$0xff]   ;;  %v704_v12 = vld [vmem:[#allocation10 + $0x18] sm:$0xff]  }
  0x72   :  { %640 = vmatprep.subr.bf16.mxu1 %v700_v8  ;;  %v696_v11 = vld [vmem:[#allocation8 + $0x28] sm:$0xff]   ;;  %v697_v13 = vld [vmem:[#allocation8 + $0x30] sm:$0xff]   ;;  %v706_v14 = vld [vmem:[#allocation10 + $0x20] sm:$0xff]  }
  0x73   :  { %634 = vmatprep.mubr.bf16.mxu0 %v124_v7  ;;  %v698_v15 = vld [vmem:[#allocation8 + $0x38] sm:$0xff]   ;;  %v708_v16 = vld [vmem:[#allocation10 + $0x28] sm:$0xff]   ;;  %v250_v17 = vld [vmem:[#allocation5] sm:$0xff] }
  0x74   :  { %621 = vmatpush3.bf16.msra.mxu0 %v692_v1  ;;  %v251_v18 = vld [vmem:[#allocation5 + $0x8] sm:$0xff]  ;;  %v122_v20 = vld [vmem:[#allocation2 + $0x10] sm:$0xff]  ;;  %v123_v21 = vld [vmem:[#allocation2 + $0x18] sm:$0xff] }
  0x75   :  { %622 = vmatprep.subr.bf16.mxu0 %v693_v2  ;;  %641 = vmatpush3.bf16.msra.mxu1 %v700_v8  ;;  %v254_v19 = vpack.c.bf16 %v251_v18, %v250_v17  ;;  %v701_v22 = vld [vmem:[#allocation11] sm:$0xff]   ;;  %v710_v23 = vld [vmem:[#allocation10 + $0x30] sm:$0xff]   ;;  %v125_v24 = vpack.c.bf16 %v123_v21, %v122_v20  ;;  %v381_v26 = vld [vmem:[#allocation7 + $0x8] sm:$0xff] }
  0x76   :  { %642 = vmatprep.subr.bf16.mxu1 %v702_v10  ;;  %v380_v25 = vld [vmem:[#allocation7] sm:$0xff]  ;;  %v703_v27 = vld [vmem:[#allocation11 + $0x8] sm:$0xff]   ;;  %v712_v28 = vld [vmem:[#allocation10 + $0x38] sm:$0xff]  }
  0x77   :  { %654 = vmatprep.mubr.bf16.mxu1 %v254_v19  ;;  %v384_v29 = vpack.c.bf16 %v381_v26, %v380_v25  ;;  %v252_v30 = vld [vmem:[#allocation5 + $0x10] sm:$0xff]  ;;  %v253_v31 = vld [vmem:[#allocation5 + $0x18] sm:$0xff]  ;;  %v709_v35 = vld [vmem:[#allocation11 + $0x20] sm:$0xff]  }
  0x78   :  { %623 = vmatpush3.bf16.msra.mxu0 %v693_v2  ;;  %v705_v32 = vld [vmem:[#allocation11 + $0x10] sm:$0xff]   ;;  %v255_v33 = vpack.c.bf16 %v253_v31, %v252_v30  ;;  %v707_v34 = vld [vmem:[#allocation11 + $0x18] sm:$0xff]   ;;  %v711_v36 = vld [vmem:[#allocation11 + $0x28] sm:$0xff]  }
  0x79   :  { %624 = vmatprep.subr.bf16.mxu0 %v694_v3  ;;  %643 = vmatpush3.bf16.msra.mxu1 %v702_v10  ;;  %v713_v37 = vld [vmem:[#allocation11 + $0x30] sm:$0xff]   ;;  %v714_v38 = vld [vmem:[#allocation11 + $0x38] sm:$0xff]   ;;  %v561_v42 = vld [vmem:[%s1169_s6] ss:$0 sm:$0xff]  ;;  %s847_s6 = scalar_lea.vmem %s516_s21, 512 }
  0x7a   :  { %644 = vmatprep.subr.bf16.mxu1 %v704_v12  ;;  %v382_v39 = vld [vmem:[#allocation7 + $0x10] sm:$0xff]  ;;  %v383_v40 = vld [vmem:[#allocation7 + $0x18] sm:$0xff]  ;;  %v570_v51 = vld [vmem:[%s1170_s7] ss:$0 sm:$0xff]  ;;  %p848_p6 = scmp.ne.s32.totalorder %s516_s21, %s847_s6  ;;  %p853_p8 = scmp.lt.s32.totalorder %s847_s6, %s847_s6 }
  0x7b   :  { %v385_v41 = vpack.c.bf16 %v383_v40, %v382_v39 }
  0x7c   :  { %625 = vmatpush3.bf16.msra.mxu0 %v694_v3  ;;  %p854_p9 = por %p853_p8, %p852_p7 }
  0x7d   :  { %626 = vmatprep.subr.bf16.mxu0 %v695_v9  ;;  %645 = vmatpush3.bf16.msra.mxu1 %v704_v12 }
  0x7e   :  { %646 = vmatprep.subr.bf16.mxu1 %v706_v14  ;;  %p855_p10 = pnand %p854_p9, %p848_p6 }
  0x80   :  { %627 = vmatpush3.bf16.msra.mxu0 %v695_v9 }
  0x81   :  { %628 = vmatprep.subr.bf16.mxu0 %v696_v11  ;;  %647 = vmatpush3.bf16.msra.mxu1 %v706_v14 }
  0x82   :  { %648 = vmatprep.subr.bf16.mxu1 %v708_v16 }
  0x84   :  { %629 = vmatpush3.bf16.msra.mxu0 %v696_v11 }
  0x85   :  { %630 = vmatprep.subr.bf16.mxu0 %v697_v13  ;;  %649 = vmatpush3.bf16.msra.mxu1 %v708_v16 }
  0x86   :  { %650 = vmatprep.subr.bf16.mxu1 %v710_v23 }
  0x88   :  { %631 = vmatpush3.bf16.msra.mxu0 %v697_v13 }
  0x89   :  { %632 = vmatprep.subr.bf16.mxu0 %v698_v15  ;;  %651 = vmatpush3.bf16.msra.mxu1 %v710_v23 }
  0x8a   :  { %652 = vmatprep.subr.bf16.mxu1 %v712_v28 }
  0x8c   :  { %633 = vmatpush3.bf16.msra.mxu0 %v698_v15 }
  0x8d   :  { %658 = vmatprep.subr.bf16.mxu0 %v701_v22  ;;  %653 = vmatpush3.bf16.msra.mxu1 %v712_v28 }
  0x8f   :  { %635 = vmatmul.mubr.bf16.vlgmr.msra.gmra.mrb[0].mxu0 %v125_v24 }
  0x90   :  { %659 = vmatpush3.bf16.msra.mxu0 %v701_v22  ;;  %674 = vmatprep.mubr.bf16.mxu0 %v384_v29 }
  0x91   :  { %660 = vmatprep.subr.bf16.mxu0 %v703_v27  ;;  %655 = vmatmul.mubr.bf16.vlgmr.msra.gmra.mrb[0].mxu1 %v255_v33 }
  0x94   :  { %661 = vmatpush3.bf16.msra.mxu0 %v703_v27 }
  0x95   :  { %662 = vmatprep.subr.bf16.mxu0 %v705_v32 }
  0x98   :  { %663 = vmatpush3.bf16.msra.mxu0 %v705_v32 }
  0x99   :  { %664 = vmatprep.subr.bf16.mxu0 %v707_v34 }
  0x9c   :  { %665 = vmatpush3.bf16.msra.mxu0 %v707_v34 }
  0x9d   :  { %666 = vmatprep.subr.bf16.mxu0 %v709_v35 }
  0xa0   :  { %667 = vmatpush3.bf16.msra.mxu0 %v709_v35 }
  0xa1   :  { %668 = vmatprep.subr.bf16.mxu0 %v711_v36 }
  0xa4   :  { %669 = vmatpush3.bf16.msra.mxu0 %v711_v36 }
  0xa5   :  { %670 = vmatprep.subr.bf16.mxu0 %v713_v37 }
  0xa8   :  { %671 = vmatpush3.bf16.msra.mxu0 %v713_v37 }
  0xa9   :  { %672 = vmatprep.subr.bf16.mxu0 %v714_v38 }
  0xac   :  { %673 = vmatpush3.bf16.msra.mxu0 %v714_v38 }
  0xaf   :  { %675 = vmatmul.mubr.bf16.vlgmr.msra.gmra.mrb[4].mxu0 %v385_v41 }
 0x162   :  { %v636_v43 = vpop.f32.mrb[0].mxu0 }
 0x163   :  { %v240_v44 = vadd.f32 %v636_v43, %v561_v42  ;;  %v231_v45 = vpop.f32.mrb[1].mxu0 }
 0x164   :  { %v232_v46 = vadd.f32 %v561_v42, %v231_v45  ;;  %v637_v47 = vpop.f32.mrb[2].mxu0 }
 0x165   :  { %248 = vst [vmem:[#allocation13 + $0x10] sm:$0xff] %v240_v44  ;;  %v243_v48 = vadd.f32 %v637_v47, %v561_v42  ;;  %v234_v49 = vpop.f32.mrb[3].mxu0 }
 0x166   :  { %246 = vst [vmem:[#allocation13] sm:$0xff] %v232_v46  ;;  %v235_v50 = vadd.f32 %v561_v42, %v234_v49 }
 0x167   :  { %249 = vst [vmem:[#allocation13 + $0x18] sm:$0xff] %v243_v48 }
 0x168   :  { %247 = vst [vmem:[#allocation13 + $0x8] sm:$0xff] %v235_v50 }
 0x169   :  { %858 = shalt.err (!%p855_p10)
}
 0x16a   :  { %s859_s25 = scalar_lea.hbm %s1172_s9, 512 }
 0x16b   :  { %p860_p11 = scmp.ne.s32.totalorder %s1172_s9, %s859_s25  ;;  %p863_p12 = scmp.lt.u32.totalorder %s859_s25, %s1172_s9 }
 0x16d   :  { %p865_p13 = pnand %p863_p12, %p860_p11 }
 0x16f   :  { %868 = shalt.err (!%p865_p13)
}
 0x170   :  { %521 = dma.vmem_to_hbm [thread:$0]  %s516_s21, 512, %s1172_s9, [#allocation4], %s927_s29, %s927_s29, %s928_s30   ;;  %v656_v52 = vpop.f32.mrb[0].mxu1 }
 0x171   :  { %v370_v53 = vadd.f32 %v656_v52, %v570_v51  ;;  %v361_v54 = vpop.f32.mrb[1].mxu1  ;;  %s936_s14 = smov [#allocation14]  }
 0x172   :  { %s527_s15 = sshll.u32 %s936_s14, 4  ;;  %v362_v55 = vadd.f32 %v570_v51, %v361_v54  ;;  %v657_v56 = vpop.f32.mrb[2].mxu1  ;;  %s528_s15 = int_to_ptr.vmem [resolvable:$true] %s527_s15 }
 0x173   :  { %378 = vst [vmem:[#allocation14 + $0x10] sm:$0xff] %v370_v53  ;;  %v373_v57 = vadd.f32 %v657_v56, %v570_v51  ;;  %v364_v58 = vpop.f32.mrb[3].mxu1  ;;  %s869_s0 = scalar_lea.vmem %s528_s15, 512  ;;  %p874_p1 = scmp.lt.s32.totalorder %s528_s15, %s528_s15 }
 0x174   :  { %376 = vst [vmem:[#allocation14] sm:$0xff] %v362_v55  ;;  %v365_v59 = vadd.f32 %v570_v51, %v364_v58  ;;  %p870_p0 = scmp.ne.s32.totalorder %s528_s15, %s869_s0  ;;  %p875_p2 = scmp.lt.s32.totalorder %s869_s0, %s869_s0 }
 0x175   :  { %379 = vst [vmem:[#allocation14 + $0x18] sm:$0xff] %v373_v57 }
 0x176   :  { %377 = vst [vmem:[#allocation14 + $0x8] sm:$0xff] %v365_v59  ;;  %p876_p3 = por %p875_p2, %p874_p1 }
 0x178   :  { %p877_p4 = pnand %p876_p3, %p870_p0 }
 0x17a   :  { %880 = shalt.err (!%p877_p4)
}
 0x17b   :  { %s881_s16 = scalar_lea.hbm %s1173_s10, 512 }
 0x17c   :  { %p882_p5 = scmp.ne.s32.totalorder %s1173_s10, %s881_s16  ;;  %p885_p6 = scmp.lt.u32.totalorder %s881_s16, %s1173_s10 }
 0x17e   :  { %p887_p7 = pnand %p885_p6, %p882_p5 }
 0x180   :  { %890 = shalt.err (!%p887_p7)
}
 0x181   :  { %533 = dma.vmem_to_hbm [thread:$0]  %s528_s15, 512, %s1173_s10, [#allocation15], %s927_s29, %s927_s29, %s928_s30  }
 0x182   :  { %v579_v60 = vld [vmem:[%s1171_s8] ss:$0 sm:$0xff]  ;;  %v676_v61 = vpop.f32.mrb[4].mxu0  ;;  %s937_s20 = smov [#allocation16]  }
 0x183   :  { %v500_v62 = vadd.f32 %v676_v61, %v579_v60  ;;  %v491_v63 = vpop.f32.mrb[5].mxu0  ;;  %s539_s22 = sshll.u32 %s937_s20, 4  ;;  %s540_s22 = int_to_ptr.vmem [resolvable:$true] %s539_s22 }
 0x184   :  { %v492_v0 = vadd.f32 %v579_v60, %v491_v63  ;;  %v677_v1 = vpop.f32.mrb[6].mxu0  ;;  %s891_s10 = scalar_lea.vmem %s540_s22, 512  ;;  %p896_p9 = scmp.lt.s32.totalorder %s540_s22, %s540_s22 }
 0x185   :  { %508 = vst [vmem:[#allocation16 + $0x10] sm:$0xff] %v500_v62  ;;  %v503_v2 = vadd.f32 %v677_v1, %v579_v60  ;;  %v494_v3 = vpop.f32.mrb[7].mxu0  ;;  %p892_p8 = scmp.ne.s32.totalorder %s540_s22, %s891_s10  ;;  %p897_p10 = scmp.lt.s32.totalorder %s891_s10, %s891_s10 }
 0x186   :  { %506 = vst [vmem:[#allocation16] sm:$0xff] %v492_v0  ;;  %v495_v4 = vadd.f32 %v579_v60, %v494_v3 }
 0x187   :  { %509 = vst [vmem:[#allocation16 + $0x18] sm:$0xff] %v503_v2  ;;  %p898_p11 = por %p897_p10, %p896_p9 }
 0x188   :  { %507 = vst [vmem:[#allocation16 + $0x8] sm:$0xff] %v495_v4 }
 0x189   :  { %p899_p12 = pnand %p898_p11, %p892_p8 }
 0x18b   :  { %902 = shalt.err (!%p899_p12)
}
 0x18c   :  { %s903_s23 = scalar_lea.hbm %s1174_s11, 512 }
 0x18d   :  { %p904_p13 = scmp.ne.s32.totalorder %s1174_s11, %s903_s23  ;;  %p907_p0 = scmp.lt.u32.totalorder %s903_s23, %s1174_s11 }
 0x18f   :  { %p909_p1 = pnand %p907_p0, %p904_p13 }
 0x191   :  { %912 = shalt.err (!%p909_p1)
}
 0x192   :  { %545 = dma.vmem_to_hbm [thread:$0]  %s540_s22, 512, %s1174_s11, [#allocation15], %s927_s29, %s927_s29, %s928_s30  }
 0x193   :  { %921 = dma.done.wait [#allocation4], 512  }
 0x194   :  { %922 = vsyncadd [#allocation4], 4294966784 }
 0x195   :  { %923 = dma.done.wait [#allocation15], 1024  }
 0x196   :  { %924 = vsyncadd [#allocation15], 4294966272 }
 0x197   :  { %555 = vsyncpa [#allocation3], 1 }
 0x198   :  { %556 = vsyncpa [#allocation6], 1 }
 0x199   :  { %557 = vsyncpa [#allocation9], 1 }
 0x19a   :  { %558 = vsyncpa [#allocation12], 1 }
 0x19b   :  { %559 = vsyncpa [#allocation4], 1 }
 0x19c   :  { %560 = vsyncpa [#allocation15], 1 }

</bundles_post_ra>
